<compile_context>
chip_gen: v7x
topology: tpu7x:2x2x1
jax: 0.10.0
libtpu: 0.0.40
codegen_flags: <defaults>
</compile_context>

<pallas_src>
import jax
import jax.numpy as jnp
from jax import lax
from jax.experimental import pallas as pl
from jax.experimental.pallas import tpu as pltpu

_LANES = 128
_SUBLANES = 8
_FAST_PATH_ELEMS = 128 * 1024        # below this XLA fusion beats any kernel launch
_TARGET_BLOCK_ROWS = 8192            # (8192,128): 4 MiB f32 / 2 MiB bf16 per input block
_VMEM_LIMIT_BYTES = 48 * 1024 * 1024  # headroom inside v7x's 64 MiB physical VMEM


def _make_mse_kernel(tile_r, rows, fold):
    """Build the per-tile partial-sum kernel (all sizes are static Python ints)."""
    tail_rows = rows % tile_r  # valid rows in the ragged last block (0 == exact fit)

    def kernel(s_ref, l_ref, acc_ref):
        i = pl.program_id(0)

        @pl.when(i == 0)
        def _init():
            acc_ref[...] = jnp.zeros_like(acc_ref)

        def accumulate(mask_tail):
            d = s_ref[...].astype(jnp.float32) - l_ref[...].astype(jnp.float32)
            if mask_tail:
                # Rows past the valid range of the ragged last block hold
                # unspecified data; zero them before squaring (select, not
                # arithmetic, so garbage NaNs cannot propagate).
                rid = lax.broadcasted_iota(jnp.int32, (tile_r, _LANES), 0)
                d = jnp.where(rid < tail_rows, d, 0.0)
            sq = d * d
            # Fold rows onto the lane-dense (fold,128) accumulator: pure VPU
            # adds, no cross-lane XLU work anywhere in the kernel.
            acc_ref[...] += sq.reshape(tile_r // fold, fold, _LANES).sum(axis=0)

        if tail_rows == 0:
            accumulate(False)
        else:
            last = pl.num_programs(0) - 1

            @pl.when(i != last)
            def _steady():
                accumulate(False)

            @pl.when(i == last)
            def _ragged_tail():
                accumulate(True)

    return kernel


def mse_loss_pallas(score, label, *, force_pallas=False, block_rows=None):
    """Equivalent of LossFunc.forward(score, label) == mse_loss(score, label)."""
    score_sq = jnp.squeeze(jnp.asarray(score))
    label = jnp.asarray(label)
    out_shape = jnp.broadcast_shapes(score_sq.shape, label.shape)

    n = 1
    for dim in out_shape:
        n *= int(dim)

    # The Pallas path needs n to map onto whole (8,128) vregs so the flat ->
    # (rows,128) reshape is a free bitcast (no jnp.pad copy anywhere).
    aligned = n > 0 and (n % (_SUBLANES * _LANES) == 0)
    use_pallas = aligned and (force_pallas or n >= _FAST_PATH_ELEMS)

    if not use_pallas:
        # XLA's fused subtract-square-reduce is already at HBM roofline and has
        # no launch / pad / copy overhead — the right choice for tiny or
        # non-vreg-aligned inputs.
        d = score_sq.astype(jnp.float32) - label.astype(jnp.float32)
        return jnp.mean(d * d)

    # Broadcast only an operand that genuinely needs it (typically a small
    # label vector); operands already at out_shape are passed through untouched
    # so the common case costs zero extra HBM traffic.
    s = score_sq if score_sq.shape == out_shape else jnp.broadcast_to(score_sq, out_shape)
    l = label if label.shape == out_shape else jnp.broadcast_to(label, out_shape)

    rows = n // _LANES                  # multiple of 8 by construction
    s2 = s.reshape(rows, _LANES)        # contiguous reshape: free
    l2 = l.reshape(rows, _LANES)

    if block_rows is None:
        tile_r = min(_TARGET_BLOCK_ROWS, rows)
    else:
        # Test hook: force smaller blocks (must stay a multiple of 8).
        tile_r = max(_SUBLANES, min((int(block_rows) // _SUBLANES) * _SUBLANES, rows))
    fold = 32 if tile_r % 32 == 0 else _SUBLANES   # 4 interleaved add chains when possible
    num_tiles = pl.cdiv(rows, tile_r)

    partial = pl.pallas_call(
        _make_mse_kernel(tile_r, rows, fold),
        out_shape=jax.ShapeDtypeStruct((fold, _LANES), jnp.float32),
        grid_spec=pltpu.PrefetchScalarGridSpec(
            num_scalar_prefetch=0,
            grid=(num_tiles,),
            in_specs=[
                pl.BlockSpec((tile_r, _LANES), lambda i: (i, 0)),
                pl.BlockSpec((tile_r, _LANES), lambda i: (i, 0)),
            ],
            # Lane-dense accumulator block, resident across the whole grid.
            out_specs=pl.BlockSpec((fold, _LANES), lambda i: (0, 0)),
        ),
        compiler_params=pltpu.CompilerParams(
            dimension_semantics=("arbitrary",),
            vmem_limit_bytes=_VMEM_LIMIT_BYTES,
        ),
    )(s2, l2)

    # Tiny cross-lane reduce + division by the TRUE element count in the wrapper.
    return jnp.sum(partial) / jnp.float32(n)


if __name__ == "__main__":
    key = jax.random.PRNGKey(0)
    k1, k2, k3, k4, k5, k6 = jax.random.split(key, 6)

    # Case 1: tiny per-sample quality-score regressor shapes -> XLA fast path.
    score_small = jax.random.normal(k1, (8, 1), dtype=jnp.float32)
    label_small = jax.random.normal(k2, (8,), dtype=jnp.float32)
    loss_small = mse_loss_pallas(score_small, label_small)

    # Case 2: image-shaped score/label (vreg-aligned), forced through the
    # Pallas kernel as a single block.
    score_img = jax.random.normal(k3, (2, 4, 32, 32), dtype=jnp.float32)
    label_img = jax.random.normal(k4, (2, 4, 32, 32), dtype=jnp.float32)
    loss_img = mse_loss_pallas(score_img, label_img, force_pallas=True)

    # Case 3: bf16 inputs with a multi-tile grid and a ragged last block
    # (exercises accumulation across grid steps + in-kernel tail masking).
    score_big = jax.random.normal(k5, (11, 1024), dtype=jnp.bfloat16)
    label_big = jax.random.normal(k6, (11, 1024), dtype=jnp.bfloat16)
    loss_big = mse_loss_pallas(score_big, label_big, force_pallas=True, block_rows=16)

    jax.block_until_ready((loss_small, loss_img, loss_big))

    # Reference checks in plain JAX (same semantics as the torch module;
    # computed in f32 like the kernel's accumulation).
    ref_small = jnp.mean((jnp.squeeze(score_small) - label_small) ** 2)
    ref_img = jnp.mean((jnp.squeeze(score_img) - label_img) ** 2)
    ref_big = jnp.mean(
        (jnp.squeeze(score_big).astype(jnp.float32) - label_big.astype(jnp.float32)) ** 2
    )

    assert jnp.allclose(loss_small, ref_small, atol=1e-6, rtol=1e-6), (loss_small, ref_small)
    assert jnp.allclose(loss_img, ref_img, atol=1e-5, rtol=1e-5), (loss_img, ref_img)
    assert jnp.allclose(loss_big, ref_big, atol=1e-5, rtol=1e-5), (loss_big, ref_big)

    print("KERNEL_OK")
</pallas_src>

<mosaic_0001>
module attributes {stable_mosaic.version = 11 : i64} {
  func.func @kernel(%arg0: i32, %arg1: memref<64x128xf32, #tpu.memory_space<vmem>>, %arg2: memref<64x128xf32, #tpu.memory_space<vmem>>, %arg3: memref<32x128xf32, #tpu.memory_space<vmem>>) attributes {dimension_semantics = [#tpu.dimension_semantics<arbitrary>], iteration_bounds = array<i64: 1>, scalar_prefetch = 0 : i64, scratch_operands = 0 : i64, tpu.core_type = #tpu.core_type<tc>, window_params = [{transform_indices = @transform_0, window_bounds = array<i64: 64, 128>}, {transform_indices = @transform_1, window_bounds = array<i64: 64, 128>}, {pipeline_mode = #tpu.pipeline_mode<synchronous>, transform_indices = @transform_2, window_bounds = array<i64: 32, 128>}]} {
    %c0_i32 = arith.constant 0 : i32
    %0 = arith.cmpi eq, %arg0, %c0_i32 : i32
    %1 = arith.extui %0 : i1 to i32
    %c0_i32_0 = arith.constant 0 : i32
    %2 = arith.cmpi ne, %1, %c0_i32_0 : i32
    scf.if %2 {
      %cst_8 = arith.constant 0.000000e+00 : f32
      %12 = vector.broadcast %cst_8 : f32 to vector<32x128xf32>
      %c0_9 = arith.constant 0 : index
      %c0_10 = arith.constant 0 : index
      %13 = vector.load %arg3[%c0_9, %c0_10] : memref<32x128xf32, #tpu.memory_space<vmem>>, vector<32x128xf32>
      tpu.vector_store %arg3[%c0_9, %c0_10], %12 {strides = array<i32>} : memref<32x128xf32, #tpu.memory_space<vmem>>, vector<32x128xf32>,
    } else {
    }
    %c0 = arith.constant 0 : index
    %c0_1 = arith.constant 0 : index
    %3 = vector.load %arg1[%c0, %c0_1] : memref<64x128xf32, #tpu.memory_space<vmem>>, vector<64x128xf32>
    %c0_2 = arith.constant 0 : index
    %c0_3 = arith.constant 0 : index
    %4 = vector.load %arg2[%c0_2, %c0_3] : memref<64x128xf32, #tpu.memory_space<vmem>>, vector<64x128xf32>
    %5 = arith.subf %3, %4 : vector<64x128xf32>
    %6 = arith.mulf %5, %5 : vector<64x128xf32>
    %c0_4 = arith.constant 0 : index
    %c0_5 = arith.constant 0 : index
    %7 = vector.load %arg3[%c0_4, %c0_5] : memref<32x128xf32, #tpu.memory_space<vmem>>, vector<32x128xf32>
    %8 = vector.shape_cast %6 : vector<64x128xf32> to vector<2x32x128xf32>
    %cst = arith.constant dense<0.000000e+00> : vector<32x128xf32>
    %9 = vector.multi_reduction <add>, %8, %cst [0] : vector<2x32x128xf32> to vector<32x128xf32>
    %10 = arith.addf %7, %9 : vector<32x128xf32>
    %c0_6 = arith.constant 0 : index
    %c0_7 = arith.constant 0 : index
    %11 = vector.load %arg3[%c0_6, %c0_7] : memref<32x128xf32, #tpu.memory_space<vmem>>, vector<32x128xf32>
    tpu.vector_store %arg3[%c0_6, %c0_7], %10 {strides = array<i32>} : memref<32x128xf32, #tpu.memory_space<vmem>>, vector<32x128xf32>,
    return
  }
  func.func @transform_0(%arg0: i32) -> (i32, i32) {
    %c0_i32 = arith.constant 0 : i32
    %c0_i32_0 = arith.constant 0 : i32
    return %arg0, %c0_i32 : i32, i32
  }
  func.func @transform_1(%arg0: i32) -> (i32, i32) {
    %c0_i32 = arith.constant 0 : i32
    %c0_i32_0 = arith.constant 0 : i32
    return %arg0, %c0_i32 : i32, i32
  }
  func.func @transform_2(%arg0: i32) -> (i32, i32) {
    %c0_i32 = arith.constant 0 : i32
    %c0_i32_0 = arith.constant 0 : i32
    %c0_i32_1 = arith.constant 0 : i32
    return %c0_i32, %c0_i32_0 : i32, i32
  }
}

</mosaic_0001>

<bundles_post_ra>
// kernel: tpu_custom_call.1
= control target key start
LH: loop header
LB: loop body
LE: loop exit
PB: predicated region body
PF: predicated region fallthrough
CT: control target
= control target key end

     0   :  { %7 = vsyncpa [#allocation3], 0  ;;  %s257_s0 = inlined_call_operand.hbm [shape: f32[64,128], index: 0, kind: input, shape index: {}]   ;;  %s258_s1 = inlined_call_operand.hbm [shape: f32[64,128], index: 1, kind: input, shape index: {}]   ;;  %s259_s2 = inlined_call_operand.hbm [shape: f32[32,128], index: 2, kind: output, shape index: {}]  }
   0x1   :  { %8 = vsyncpa [#allocation6], 0 }
   0x2   :  { %9 = vsyncpa [#allocation4], 0  ;;  %s192_s9 = smov [#allocation2]   ;;  %s120_s13 = scalar_lea.hbm %s257_s0, 1024 }
   0x3   :  { %s15_s10 = sshll.u32 %s192_s9, 4  ;;  %p121_p0 = scmp.ne.s32.totalorder %s257_s0, %s120_s13  ;;  %s16_s10 = int_to_ptr.vmem [resolvable:$true] %s15_s10 }
   0x4   :  { %p124_p1 = scmp.lt.u32.totalorder %s120_s13, %s257_s0 }
   0x6   :  { %p126_p2 = pnand %p124_p1, %p121_p0 }
   0x8   :  { %129 = shalt.err (!%p126_p2)
}
   0x9   :  { %s130_s18 = scalar_lea.vmem %s16_s10, 1024  ;;  %p135_p4 = scmp.lt.s32.totalorder %s16_s10, %s16_s10 }
   0xa   :  { %p131_p3 = scmp.ne.s32.totalorder %s16_s10, %s130_s18  ;;  %p136_p5 = scmp.lt.s32.totalorder %s130_s18, %s130_s18 }
   0xc   :  { %p137_p6 = por %p136_p5, %p135_p4 }
   0xe   :  { %p138_p7 = pnand %p137_p6, %p131_p3 }
  0x10   :  { %141 = shalt.err (!%p138_p7)
}
  0x11   :  { %s193_s19 = smov 128   ;;  %s194_s20 = smov 8  }
  0x12   :  { %21 = dma.hbm_to_vmem [thread:$0]  %s257_s0, 1024, %s16_s10, [#allocation3], %s193_s19, %s193_s19, %s194_s20  }
  0x13   :  { %s195_s23 = smov [#allocation5]   ;;  %s142_s27 = scalar_lea.hbm %s258_s1, 1024 }
  0x14   :  { %s27_s24 = sshll.u32 %s195_s23, 4  ;;  %p143_p8 = scmp.ne.s32.totalorder %s258_s1, %s142_s27  ;;  %s28_s24 = int_to_ptr.vmem [resolvable:$true] %s27_s24 }
  0x15   :  { %p146_p9 = scmp.lt.u32.totalorder %s142_s27, %s258_s1 }
  0x17   :  { %p148_p10 = pnand %p146_p9, %p143_p8 }
  0x19   :  { %151 = shalt.err (!%p148_p10)
}
  0x1a   :  { %s152_s4 = scalar_lea.vmem %s28_s24, 1024  ;;  %p157_p12 = scmp.lt.s32.totalorder %s28_s24, %s28_s24 }
  0x1b   :  { %p153_p11 = scmp.ne.s32.totalorder %s28_s24, %s152_s4  ;;  %p158_p13 = scmp.lt.s32.totalorder %s152_s4, %s152_s4 }
  0x1d   :  { %p159_p0 = por %p158_p13, %p157_p12 }
  0x1f   :  { %p160_p1 = pnand %p159_p0, %p153_p11 }
  0x21   :  { %163 = shalt.err (!%p160_p1)
}
  0x22   :  { %33 = dma.hbm_to_vmem [thread:$0]  %s258_s1, 1024, %s28_s24, [#allocation6], %s193_s19, %s193_s19, %s194_s20  }
  0x23   :  { %186 = dma.done.wait [#allocation3], 1024  }
  0x24   :  { %187 = vsyncadd [#allocation3], 4294966272 }
  0x25   :  { %188 = dma.done.wait [#allocation6], 1024  }
  0x26   :  { %189 = vsyncadd [#allocation6], 4294966272  ;;  %v48_v0 = vld [vmem:[#allocation2] sm:$0xff]  ;;  %v49_v5 = vld [vmem:[#allocation2 + $0x8] sm:$0xff]  ;;  %s196_s1 = smov [#allocation7]  }
  0x27   :  { %v52_v1 = vld [vmem:[#allocation2 + $0x20] sm:$0xff]  ;;  %v53_v6 = vld [vmem:[#allocation2 + $0x28] sm:$0xff]  ;;  %v50_v10 = vld [vmem:[#allocation2 + $0x10] sm:$0xff]  ;;  %s101_s6 = sshll.u32 %s196_s1, 4  ;;  %s102_s6 = int_to_ptr.vmem [resolvable:$true] %s101_s6 }
  0x28   :  { %v56_v2 = vld [vmem:[#allocation5] sm:$0xff]  ;;  %v57_v8 = vld [vmem:[#allocation5 + $0x8] sm:$0xff]  ;;  %v54_v14 = vld [vmem:[#allocation2 + $0x30] sm:$0xff]  ;;  %s164_s7 = scalar_lea.vmem %s102_s6, 512  ;;  %p169_p3 = scmp.lt.s32.totalorder %s102_s6, %s102_s6 }
  0x29   :  { %v60_v3 = vld [vmem:[#allocation5 + $0x20] sm:$0xff]  ;;  %v64_v4 = vsub.f32 %v48_v0, %v56_v2  ;;  %v61_v9 = vld [vmem:[#allocation5 + $0x28] sm:$0xff]  ;;  %v65_v12 = vsub.f32 %v49_v5, %v57_v8  ;;  %v58_v15 = vld [vmem:[#allocation5 + $0x10] sm:$0xff]  ;;  %p165_p2 = scmp.ne.s32.totalorder %s102_s6, %s164_s7  ;;  %p170_p4 = scmp.lt.s32.totalorder %s164_s7, %s164_s7 }
  0x2a   :  { %v68_v7 = vsub.f32 %v52_v1, %v60_v3  ;;  %v69_v13 = vsub.f32 %v53_v6, %v61_v9  ;;  %v62_v16 = vld [vmem:[#allocation5 + $0x30] sm:$0xff]  ;;  %v66_v18 = vsub.f32 %v50_v10, %v58_v15  ;;  %v51_v20 = vld [vmem:[#allocation2 + $0x18] sm:$0xff] }
  0x2b   :  { %v72_v11 = vmul.f32 %v64_v4, %v64_v4  ;;  %v70_v19 = vsub.f32 %v54_v14, %v62_v16  ;;  %v55_v21 = vld [vmem:[#allocation2 + $0x38] sm:$0xff]  ;;  %v73_v23 = vmul.f32 %v65_v12, %v65_v12  ;;  %p171_p5 = por %p170_p4, %p169_p3 }
  0x2c   :  { %v76_v17 = vmul.f32 %v68_v7, %v68_v7  ;;  %v59_v22 = vld [vmem:[#allocation5 + $0x18] sm:$0xff]  ;;  %v77_v24 = vmul.f32 %v69_v13, %v69_v13  ;;  %v74_v28 = vmul.f32 %v66_v18, %v66_v18 }
  0x2d   :  { %v63_v25 = vld [vmem:[#allocation5 + $0x38] sm:$0xff]  ;;  %v67_v26 = vsub.f32 %v51_v20, %v59_v22  ;;  %v78_v29 = vmul.f32 %v70_v19, %v70_v19  ;;  %p172_p6 = pnand %p171_p5, %p165_p2 }
  0x2e   :  { %v84_v27 = vadd.f32 %v76_v17, %v72_v11  ;;  %v71_v30 = vsub.f32 %v55_v21, %v63_v25  ;;  %v85_v31 = vadd.f32 %v77_v24, %v73_v23 }
  0x2f   :  { %v75_v32 = vmul.f32 %v67_v26, %v67_v26  ;;  %v86_v33 = vadd.f32 %v78_v29, %v74_v28 }
  0x30   :  { %v79_v34 = vmul.f32 %v71_v30, %v71_v30  ;;  %92 = vst [vmem:[#allocation7] sm:$0xff] %v84_v27  ;;  %93 = vst [vmem:[#allocation7 + $0x8] sm:$0xff] %v85_v31 }
  0x31   :  { %94 = vst [vmem:[#allocation7 + $0x10] sm:$0xff] %v86_v33 }
  0x32   :  { %v87_v35 = vadd.f32 %v79_v34, %v75_v32 }
  0x34   :  { %95 = vst [vmem:[#allocation7 + $0x18] sm:$0xff] %v87_v35 }
  0x35   :  { %175 = shalt.err (!%p172_p6)
}
  0x36   :  { %s176_s10 = scalar_lea.hbm %s259_s2, 512 }
  0x37   :  { %p177_p7 = scmp.ne.s32.totalorder %s259_s2, %s176_s10  ;;  %p180_p8 = scmp.lt.u32.totalorder %s176_s10, %s259_s2 }
  0x39   :  { %p182_p9 = pnand %p180_p8, %p177_p7 }
  0x3b   :  { %185 = shalt.err (!%p182_p9)
}
  0x3c   :  { %107 = dma.vmem_to_hbm [thread:$0]  %s102_s6, 512, %s259_s2, [#allocation4], %s193_s19, %s193_s19, %s194_s20  }
  0x3d   :  { %190 = dma.done.wait [#allocation4], 512  }
  0x3e   :  { %191 = vsyncadd [#allocation4], 4294966784 }
  0x3f   :  { %111 = vsyncpa [#allocation3], 1 }
  0x40   :  { %112 = vsyncpa [#allocation6], 1 }
  0x41   :  { %113 = vsyncpa [#allocation4], 1 }

</bundles_post_ra>
